<compile_context>
chip_gen: v7x
topology: tpu7x:2x2x1
jax: 0.10.0
libtpu: 0.0.40
codegen_flags: <defaults>
</compile_context>

<pallas_src>
import numpy as np
import jax
import jax.numpy as jnp
from jax.experimental import pallas as pl
from jax.experimental.pallas import tpu as pltpu


def _round_up(x, m):
    return ((x + m - 1) // m) * m


def _compiler_params(**kw):
    cls = getattr(pltpu, "CompilerParams", None)
    if cls is None:
        return None  # let pallas_call use its defaults on older JAX
    return cls(**kw)


# ---------------------------------------------------------------------------
# Pallas kernel: one fused matmul for the whole forward.
#   x:(tm, K_pack) @ w:(K_pack, N_pad) -> o:(tm, N_pad)
# Bias is folded into W via per-type indicator columns of X, so the body is a
# single f32 MXU matmul with a lane-dense (N_pad multiple of 128) store.
# ---------------------------------------------------------------------------
def _fused_linear_kernel(x_ref, w_ref, o_ref):
    o_ref[...] = jnp.dot(x_ref[...], w_ref[...],
                         preferred_element_type=jnp.float32)


def _fused_linear(X, W_packed, m_blocks):
    M_pad, K_pack = X.shape
    _, N_pad = W_packed.shape
    tm = M_pad // m_blocks
    return pl.pallas_call(
        _fused_linear_kernel,
        out_shape=jax.ShapeDtypeStruct((M_pad, N_pad), jnp.float32),
        grid=(m_blocks,),
        in_specs=[
            pl.BlockSpec((tm, K_pack), lambda i: (i, 0)),      # M split (v7x)
            pl.BlockSpec((K_pack, N_pad), lambda i: (0, 0)),   # shared weights
        ],
        out_specs=pl.BlockSpec((tm, N_pad), lambda i: (i, 0)),
        compiler_params=_compiler_params(
            dimension_semantics=("parallel",)),  # 2-TC M split when m_blocks=2
    )(X, W_packed)


# ---------------------------------------------------------------------------
# Parameter init (matches SparseInputLinear.reset_parameters: U(-stdv, stdv),
# stdv = 1/sqrt(out_dim)); deterministic via PRNGKey.
# ---------------------------------------------------------------------------
def init_sparse_linear_params(key, inp_dim, out_dim):
    stdv = 1.0 / float(np.sqrt(out_dim))
    kw, kb = jax.random.split(key)
    w = jax.random.uniform(kw, (inp_dim, out_dim), jnp.float32, -stdv, stdv)
    b = jax.random.uniform(kb, (out_dim,), jnp.float32, -stdv, stdv)
    return w, b


# ---------------------------------------------------------------------------
# One-time weight packing (hoisted out of the per-forward path).
# Packed K-axis layout (rows of W / columns of X):
#   [ K_0 | K_1 | ... | K_{T-1} | T bias rows (row K_raw+t = b_t) | pad to 8 ]
# An input row of type t has its features at column offset off_t and a 1.0 in
# indicator column K_raw+t, so X @ W_packed == x @ W_t + b_t.
# ---------------------------------------------------------------------------
def pack_multi_han_weights(params):
    T = len(params)
    N = params[0][0].shape[1]
    N_pad = _round_up(N, 128)                 # lane-dense output stores
    k_list = [int(w.shape[0]) for w, _ in params]
    K_raw = sum(k_list)
    K_pack = _round_up(K_raw + T, 8)          # blocks are full-extent, so only
                                              # a tidy 8-multiple is needed

    rows = [w.astype(jnp.float32) for w, _ in params]
    rows.append(jnp.stack([b.astype(jnp.float32) for _, b in params], axis=0))
    W_rows = jnp.concatenate(rows, axis=0)                        # (K_raw+T, N)
    W_packed = jnp.pad(W_rows, ((0, K_pack - (K_raw + T)), (0, N_pad - N)))

    offsets = tuple(int(o) for o in np.concatenate([[0], np.cumsum(k_list)]))
    meta = dict(T=T, N=N, N_pad=N_pad, k_list=tuple(k_list),
                offsets=offsets, K_raw=K_raw, K_pack=K_pack)
    return W_packed, meta


# ---------------------------------------------------------------------------
# multi_HAN forward (yelp branch): every SparseInputLinear projection of the
# forward fused into a single-step Pallas matmul.
# ---------------------------------------------------------------------------
def make_multi_han_forward(meta):
    T = meta["T"]
    N = meta["N"]
    K_raw = meta["K_raw"]
    K_pack = meta["K_pack"]
    offsets = meta["offsets"]
    k_list = meta["k_list"]

    def _row_block(x2, t):
        """(m, K_t) segment -> (m, K_pack): features at off_t + bias indicator."""
        m, kt = x2.shape
        assert kt == k_list[t]
        off = offsets[t]
        pieces = []
        if off:
            pieces.append(jnp.zeros((m, off), jnp.float32))
        pieces.append(x2)
        mid = (K_raw - off - kt) + t
        if mid:
            pieces.append(jnp.zeros((m, mid), jnp.float32))
        pieces.append(jnp.ones((m, 1), jnp.float32))      # selects bias row b_t
        right = K_pack - (K_raw + t + 1)
        if right:
            pieces.append(jnp.zeros((m, right), jnp.float32))
        return jnp.concatenate(pieces, axis=1)

    def forward(W_packed, users, businesses,
                user_neigh_list_lists, business_neigh_list_lists):
        segs = []      # (kind, idx, leading_shape, n_rows)
        blocks = []

        def add(t, arr, kind, idx):
            lead = arr.shape[:-1]
            m = int(np.prod(lead)) if lead else 1
            x2 = arr.reshape(m, arr.shape[-1]).astype(jnp.float32)
            blocks.append(_row_block(x2, t))
            segs.append((kind, idx, lead, m))

        add(0, users, "user", None)              # user_emb_init(users)
        add(1, businesses, "business", None)     # business_emb_init(businesses)
        n_un = 0
        for t, neigh_list in enumerate(user_neigh_list_lists):
            for neigh in neigh_list:
                add(t, neigh, "uneigh", n_un)
                n_un += 1
        n_bn = 0
        for t, neigh_list in enumerate(business_neigh_list_lists):
            for neigh in neigh_list:
                add(t, neigh, "bneigh", n_bn)
                n_bn += 1

        X = jnp.concatenate(blocks, axis=0)
        M_total = X.shape[0]
        # v7x megacore: split M across the 2 TensorCores only once the matmul
        # is big enough to amortize per-step overhead; toy sizes stay 1 step.
        m_blocks = 2 if M_total >= 256 else 1
        M_pad = _round_up(M_total, 8 * m_blocks)
        X = jnp.pad(X, ((0, M_pad - M_total), (0, 0)))

        Y = _fused_linear(X, W_packed, m_blocks)

        user_emb = None
        business_emb = None
        u_ne = [None] * n_un
        b_ne = [None] * n_bn
        row = 0
        for kind, idx, lead, m in segs:
            y = Y[row:row + m, :N].reshape(lead + (N,))
            row += m
            if kind == "user":
                user_emb = y
            elif kind == "business":
                business_emb = y
            elif kind == "uneigh":
                u_ne[idx] = y
            else:
                b_ne[idx] = y

        # TODO(synk): HomoAttention / HeteAttention / UserItemAttention class
        # bodies are not provided in the source module, so the attention fusion
        # and final logit cannot be reproduced; return the Pallas-computed
        # embeddings that feed them.
        return user_emb, business_emb, u_ne, b_ne

    return forward


# ---------------------------------------------------------------------------
# Pure-JAX reference (correctness check of the Pallas path).
# ---------------------------------------------------------------------------
def _ref_forward(params, users, businesses, u_lists, b_lists):
    def lin(x, p):
        w, b = p
        return x @ w + b
    user_emb = lin(users, params[0])
    business_emb = lin(businesses, params[1])
    u_ne = [lin(n, params[t]) for t, nl in enumerate(u_lists) for n in nl]
    b_ne = [lin(n, params[t]) for t, nl in enumerate(b_lists) for n in nl]
    return user_emb, business_emb, u_ne, b_ne


# ---------------------------------------------------------------------------
# Demo
# ---------------------------------------------------------------------------
if __name__ == "__main__":
    # args-equivalent config (small, consistent with the module)
    n_facet = 4
    emb_dim = 8
    cur_dim = n_facet * emb_dim            # 32
    n_users, n_businesses, n_cities, n_categories = 16, 16, 8, 8
    n_nodes_list = [n_users, n_businesses, n_cities, n_categories]
    batch = 2
    n_neigh = 4

    key = jax.random.PRNGKey(0)
    k_params, k_inputs = jax.random.split(key)

    # four SparseInputLinear parameter sets (user / business / city / category)
    pkeys = jax.random.split(k_params, 4)
    params = [init_sparse_linear_params(pkeys[i], n_nodes_list[i], cur_dim)
              for i in range(4)]

    # dense (one-hot-like / feature) inputs, as fed to SparseInputLinear
    ikeys = jax.random.split(k_inputs, 10)
    users = jax.random.normal(ikeys[0], (batch, n_users), jnp.float32)
    businesses = jax.random.normal(ikeys[1], (batch, n_businesses), jnp.float32)

    # one neighbor tensor per node-type list: (batch, n_neigh, n_nodes_of_type)
    user_neigh_list_lists = [
        [jax.random.normal(ikeys[2 + i], (batch, n_neigh, n_nodes_list[i]),
                           jnp.float32)]
        for i in range(4)
    ]
    business_neigh_list_lists = [
        [jax.random.normal(ikeys[6 + i], (batch, n_neigh, n_nodes_list[i]),
                           jnp.float32)]
        for i in range(4)
    ]

    # Hoisted, once per model (NOT per forward): pack weights + biases.
    W_packed, meta = pack_multi_han_weights(params)
    W_packed = jax.block_until_ready(W_packed)

    fwd = jax.jit(make_multi_han_forward(meta))
    out = fwd(W_packed, users, businesses,
              user_neigh_list_lists, business_neigh_list_lists)

    # block on every output leaf
    for leaf in jax.tree_util.tree_leaves(out):
        jax.block_until_ready(leaf)

    # correctness: compare every Pallas-computed embedding with plain JAX
    ref = _ref_forward(params, users, businesses,
                       user_neigh_list_lists, business_neigh_list_lists)
    for got, want in zip(jax.tree_util.tree_leaves(out),
                         jax.tree_util.tree_leaves(ref)):
        np.testing.assert_allclose(np.asarray(got), np.asarray(want),
                                   rtol=1e-5, atol=1e-5)

    print("KERNEL_OK")
</pallas_src>

<mosaic_0001>
module attributes {stable_mosaic.version = 11 : i64} {
  func.func @_fused_linear_kernel(%arg0: i32, %arg1: memref<72x56xf32, #tpu.memory_space<vmem>>, %arg2: memref<56x128xf32, #tpu.memory_space<vmem>>, %arg3: memref<72x128xf32, #tpu.memory_space<vmem>>) attributes {dimension_semantics = [#tpu.dimension_semantics<parallel>], iteration_bounds = array<i64: 1>, scalar_prefetch = 0 : i64, scratch_operands = 0 : i64, tpu.core_type = #tpu.core_type<tc>, window_params = [{transform_indices = @transform_0, window_bounds = array<i64: 72, 56>}, {pipeline_mode = #tpu.pipeline_mode<synchronous>, transform_indices = @transform_1, window_bounds = array<i64: 56, 128>}, {transform_indices = @transform_2, window_bounds = array<i64: 72, 128>}]} {
    %c0 = arith.constant 0 : index
    %c0_0 = arith.constant 0 : index
    %0 = vector.load %arg1[%c0, %c0_0] : memref<72x56xf32, #tpu.memory_space<vmem>>, vector<72x56xf32>
    %c0_1 = arith.constant 0 : index
    %c0_2 = arith.constant 0 : index
    %1 = vector.load %arg2[%c0_1, %c0_2] : memref<56x128xf32, #tpu.memory_space<vmem>>, vector<56x128xf32>
    %cst = arith.constant dense<0.000000e+00> : vector<72x128xf32>
    %2 = tpu.matmul %0, %1, %cst {dimension_numbers = #tpu.dot_dimension_numbers<[1], [0], [0], [1], [0, 0, 1, 1], [], []>} : vector<72x56xf32>, vector<56x128xf32>, vector<72x128xf32> -> vector<72x128xf32>
    %c0_3 = arith.constant 0 : index
    %c0_4 = arith.constant 0 : index
    %3 = vector.load %arg3[%c0_3, %c0_4] : memref<72x128xf32, #tpu.memory_space<vmem>>, vector<72x128xf32>
    tpu.vector_store %arg3[%c0_3, %c0_4], %2 {strides = array<i32>} : memref<72x128xf32, #tpu.memory_space<vmem>>, vector<72x128xf32>,
    return
  }
  func.func @transform_0(%arg0: i32) -> (i32, i32) {
    %c0_i32 = arith.constant 0 : i32
    %c0_i32_0 = arith.constant 0 : i32
    return %arg0, %c0_i32 : i32, i32
  }
  func.func @transform_1(%arg0: i32) -> (i32, i32) {
    %c0_i32 = arith.constant 0 : i32
    %c0_i32_0 = arith.constant 0 : i32
    %c0_i32_1 = arith.constant 0 : i32
    return %c0_i32, %c0_i32_0 : i32, i32
  }
  func.func @transform_2(%arg0: i32) -> (i32, i32) {
    %c0_i32 = arith.constant 0 : i32
    %c0_i32_0 = arith.constant 0 : i32
    return %arg0, %c0_i32 : i32, i32
  }
}

</mosaic_0001>

<bundles_post_ra>
// kernel: forward.1
= control target key start
LH: loop header
LB: loop body
LE: loop exit
PB: predicated region body
PF: predicated region fallthrough
CT: control target
= control target key end

     0   :  { %v264_v0 = vmov 0.0|0.0   ;;  %vm265_vm0 = vmmov 0   ;;  %v266_v6 = vmov 0.0   ;;  %vm27_vm1 = vcmask 457728   ;;  %s375_s1 = inlined_call_operand.vmem [shape: f32[56,128], index: 1, kind: input, shape index: {}]   ;;  %s376_s0 = inlined_call_operand.vmem [shape: f32[72,56], index: 0, kind: input, shape index: {}]   ;;  %s377_s2 = inlined_call_operand.vmem [shape: f32[72,128], index: 2, kind: output, shape index: {}]  }
   0x1   :  { %244 = vmatprep.subr.bf16.mxu0 %v264_v0  ;;  %v20_v1 = vld [vmem:[%s375_s1] sm:$0xff]  ;;  %v21_v2 = vld [vmem:[%s375_s1 + $0x8] sm:$0xff]  ;;  %253 = vmatprep.subr.bf16.mxu1 %v264_v0  ;;  %v22_v3 = vld [vmem:[%s375_s1 + $0x10] sm:$0xff] }
   0x2   :  { %v245_v4 = vpack.c.bf16 %v21_v2, %v20_v1  ;;  %v23_v5 = vld [vmem:[%s375_s1 + $0x18] sm:$0xff]  ;;  %217 = vmatprep.mubr.msk.f32.mxu0 %vm265_vm0, %v266_v6  ;;  %232 = vmatprep.mubr.msk.f32.mxu1 %vm265_vm0, %v266_v6  ;;  %v24_v8 = vld [vmem:[%s375_s1 + $0x20] sm:$0xff]  ;;  %v25_v9 = vld [vmem:[%s375_s1 + $0x28] sm:$0xff] }
   0x3   :  { %v248_v7 = vpack.c.bf16 %v23_v5, %v22_v3  ;;  %v251_v10 = vpack.c.bf16 %v25_v9, %v24_v8  ;;  %v26_v11 = vld [vmem:[%s375_s1 + $0x30] sm:$0xff]  ;;  %v11_v12 = vld [vmem:[%s376_s0] sm:$0xff]  ;;  %v16_v13 = vld [vmem:[%s376_s0 + $0x28] sm:$0xff] }
   0x4   :  { %246 = vmatpush3.bf16.msra.mxu0 %v245_v4  ;;  %257 = vmatpush3.bf16.msra.mxu1 %v245_v4  ;;  %v12_v14 = vld [vmem:[%s376_s0 + $0x8] sm:$0xff]  ;;  %v17_v15 = vld [vmem:[%s376_s0 + $0x30] sm:$0xff]  ;;  %v18_v17 = vld [vmem:[%s376_s0 + $0x38] sm:$0xff] }
   0x5   :  { %247 = vmatprep.subr.bf16.mxu0 %v264_v0  ;;  %254 = vmatprep.subr.bf16.mxu1 %v264_v0  ;;  %v13_v16 = vld [vmem:[%s376_s0 + $0x10] sm:$0xff]  ;;  %v14_v18 = vld [vmem:[%s376_s0 + $0x18] sm:$0xff]  ;;  %v19_v19 = vld [vmem:[%s376_s0 + $0x40] sm:$0xff] }
   0x6   :  { %v15_v20 = vld [vmem:[%s376_s0 + $0x20] sm:$0xff] }
   0x8   :  { %249 = vmatpush3.bf16.msra.mxu0 %v248_v7  ;;  %258 = vmatpush3.bf16.msra.mxu1 %v248_v7 }
   0x9   :  { %250 = vmatprep.subr.bf16.mxu0 %v264_v0  ;;  %255 = vmatprep.subr.bf16.mxu1 %v264_v0 }
   0xc   :  { %252 = vmatpush3.bf16.msra.mxu0 %v251_v10  ;;  %259 = vmatpush3.bf16.msra.mxu1 %v251_v10 }
   0xd   :  { %215 = vmatprep.subr.mxu0 %v266_v6  ;;  %256 = vmatprep.subr.mxu1 %v266_v6 }
  0x10   :  { %216 = vmatpush3.msra.mxu0 %v26_v11  ;;  %260 = vmatpush3.msra.mxu1 %v26_v11 }
  0x11   :  { %218 = vmatmul.mubr.msk.f32.vlgmr.msra.gmra.mrb[0].mxu0 %vm27_vm1, %v11_v12  ;;  %233 = vmatmul.mubr.msk.f32.vlgmr.msra.gmra.mrb[0].mxu1 %vm27_vm1, %v16_v13 }
  0x12   :  { %220 = vmatprep.mubr.msk.f32.mxu0 %vm265_vm0, %v266_v6  ;;  %235 = vmatprep.mubr.msk.f32.mxu1 %vm265_vm0, %v266_v6 }
  0x15   :  { %221 = vmatmul.mubr.msk.f32.gmra.mrb[2].mxu0 %vm27_vm1, %v12_v14  ;;  %236 = vmatmul.mubr.msk.f32.gmra.mrb[2].mxu1 %vm27_vm1, %v17_v15 }
  0x16   :  { %223 = vmatprep.mubr.msk.f32.mxu0 %vm265_vm0, %v266_v6  ;;  %238 = vmatprep.mubr.msk.f32.mxu1 %vm265_vm0, %v266_v6 }
  0x19   :  { %224 = vmatmul.mubr.msk.f32.gmra.mrb[4].mxu0 %vm27_vm1, %v13_v16  ;;  %239 = vmatmul.mubr.msk.f32.gmra.mrb[4].mxu1 %vm27_vm1, %v18_v17 }
  0x1a   :  { %226 = vmatprep.mubr.msk.f32.mxu0 %vm265_vm0, %v266_v6  ;;  %241 = vmatprep.mubr.msk.f32.mxu1 %vm265_vm0, %v266_v6 }
  0x1d   :  { %227 = vmatmul.mubr.msk.f32.gmra.mrb[6].mxu0 %vm27_vm1, %v14_v18  ;;  %242 = vmatmul.mubr.msk.f32.gmra.mrb[6].mxu1 %vm27_vm1, %v19_v19 }
  0x1e   :  { %229 = vmatprep.mubr.msk.f32.mxu0 %vm265_vm0, %v266_v6 }
  0x21   :  { %230 = vmatmul.mubr.msk.f32.gmra.mrb[8].mxu0 %vm27_vm1, %v15_v20 }
  0xe4   :  { %v121_v21 = vpop.f32.mrb[0].mxu0  ;;  %v146_v22 = vpop.f32.mrb[0].mxu1 }
  0xe5   :  { %165 = vst [vmem:[%s377_s2] sm:$0xff] %v121_v21  ;;  %v219_v23 = vpop.f32.mrb[1].mxu0  ;;  %170 = vst [vmem:[%s377_s2 + $0x28] sm:$0xff] %v146_v22  ;;  %v234_v24 = vpop.f32.mrb[1].mxu1 }
  0xe8   :  { %v126_v25 = vpop.f32.mrb[2].mxu0  ;;  %v151_v26 = vpop.f32.mrb[2].mxu1 }
  0xe9   :  { %166 = vst [vmem:[%s377_s2 + $0x8] sm:$0xff] %v126_v25  ;;  %v222_v27 = vpop.f32.mrb[3].mxu0  ;;  %171 = vst [vmem:[%s377_s2 + $0x30] sm:$0xff] %v151_v26  ;;  %v237_v28 = vpop.f32.mrb[3].mxu1 }
  0xec   :  { %v131_v29 = vpop.f32.mrb[4].mxu0  ;;  %v156_v30 = vpop.f32.mrb[4].mxu1 }
  0xed   :  { %167 = vst [vmem:[%s377_s2 + $0x10] sm:$0xff] %v131_v29  ;;  %v225_v31 = vpop.f32.mrb[5].mxu0  ;;  %172 = vst [vmem:[%s377_s2 + $0x38] sm:$0xff] %v156_v30  ;;  %v240_v32 = vpop.f32.mrb[5].mxu1 }
  0xf0   :  { %v136_v33 = vpop.f32.mrb[6].mxu0  ;;  %v161_v34 = vpop.f32.mrb[6].mxu1 }
  0xf1   :  { %168 = vst [vmem:[%s377_s2 + $0x18] sm:$0xff] %v136_v33  ;;  %v228_v35 = vpop.f32.mrb[7].mxu0  ;;  %173 = vst [vmem:[%s377_s2 + $0x40] sm:$0xff] %v161_v34  ;;  %v243_v36 = vpop.f32.mrb[7].mxu1 }
  0xf4   :  { %v141_v37 = vpop.f32.mrb[8].mxu0 }
  0xf5   :  { %169 = vst [vmem:[%s377_s2 + $0x20] sm:$0xff] %v141_v37  ;;  %v231_v38 = vpop.f32.mrb[9].mxu0 }

</bundles_post_ra>
